<compile_context>
chip_gen: v5e
topology: v5e:2x2
jax: 0.10.0
libtpu: 0.0.40
codegen_flags: <defaults>
</compile_context>

<pallas_src>
import functools

import jax
import jax.numpy as jnp
from jax.experimental import pallas as pl
from jax.experimental.pallas import tpu as pltpu

LANE = 128                   # vreg lane width
BF16_SUBLANE = 16            # native bf16 vreg tile height
SINGLE_BLOCK_MAX_ROWS = 128  # below this, grid/pipeline overhead dominates


def _round_up(n: int, m: int) -> int:
    return ((n + m - 1) // m) * m


def _pad2(a, rows, cols):
    return jnp.pad(a, ((0, rows - a.shape[0]), (0, cols - a.shape[1])))


def mlp_kernel(x_ref, w1_ref, b1_ref, w2_ref, b2_ref, w3_ref, b3_ref, o_ref):
    """3-layer MLP: bf16 MXU matmuls, f32 accumulation, f32 bias+ReLU on VPU."""
    # x arrives as f32 straight from the caller; cast to bf16 here for the MXU.
    x = x_ref[...].astype(jnp.bfloat16)

    h1 = jnp.dot(x, w1_ref[...], preferred_element_type=jnp.float32)
    h1 = jnp.maximum(h1 + b1_ref[...], 0.0)

    h2 = jnp.dot(h1.astype(jnp.bfloat16), w2_ref[...],
                 preferred_element_type=jnp.float32)
    h2 = jnp.maximum(h2 + b2_ref[...], 0.0)

    out = jnp.dot(h2.astype(jnp.bfloat16), w3_ref[...],
                  preferred_element_type=jnp.float32)
    o_ref[...] = (out + b3_ref[...]).astype(o_ref.dtype)


def prepare_params(w1, b1, w2, b2, w3, b3):
    """One-time padding + bf16 cast of the weights (hoisted out of forward).

    Weights are stored [in, out] (transposed vs. torch nn.Linear, so the kernel
    does x @ W + b).  Lane (output) dims are zero-padded to multiples of 128 so
    every matmul result and the final store are lane-dense; layer 1's K dim
    stays unpadded (it matches x exactly).  Zero padding is numerically exact:
    padded columns get weight 0, bias 0, and ReLU(0) = 0.
    """
    input_size, hidden_size = w1.shape
    num_classes = w3.shape[1]
    hid_p = _round_up(hidden_size, LANE)
    out_p = _round_up(num_classes, LANE)

    w1_p = _pad2(w1, input_size, hid_p).astype(jnp.bfloat16)
    w2_p = _pad2(w2, hid_p, hid_p).astype(jnp.bfloat16)
    w3_p = _pad2(w3, hid_p, out_p).astype(jnp.bfloat16)
    # Biases stay f32: bias-add/ReLU runs on the VPU in f32 (safe on v5e, which
    # has no bf16 VALU) and is negligible vreg pressure at these widths.
    b1_p = _pad2(b1.reshape(1, -1), 1, hid_p).astype(jnp.float32)
    b2_p = _pad2(b2.reshape(1, -1), 1, hid_p).astype(jnp.float32)
    b3_p = _pad2(b3.reshape(1, -1), 1, out_p).astype(jnp.float32)
    return (w1_p, b1_p, w2_p, b2_p, w3_p, b3_p)


@functools.partial(jax.jit, static_argnames=("num_classes", "block_b"))
def neural_net_forward(x, prepared, *, num_classes, block_b=256):
    """x: [B, input_size] float32. prepared: output of prepare_params()."""
    w1_p, b1_p, w2_p, b2_p, w3_p, b3_p = prepared
    B, input_size = x.shape
    hid_p = w1_p.shape[1]
    out_p = w3_p.shape[1]

    nbytes = lambda a: a.size * a.dtype.itemsize
    weight_bytes = sum(nbytes(a) for a in prepared)

    def cost(rows):
        flops = 2 * rows * (input_size * hid_p + hid_p * hid_p + hid_p * out_p)
        bytes_accessed = rows * input_size * 4 + weight_bytes + rows * out_p * 4
        return pl.CostEstimate(flops=flops, transcendentals=0,
                               bytes_accessed=bytes_accessed)

    def vmem_limit(rows):
        io_tile = rows * input_size * 4 + rows * out_p * 4
        acts = rows * hid_p * (4 + 4 + 2 + 2)  # f32 + bf16 intermediates
        # Pallas double-buffers every operand by default; budget for that plus
        # headroom.  Explicit limit matters on v5e (16 MiB default scoped).
        # TODO(synk): for very large hidden sizes, single-buffer the resident
        # weights (pipeline_mode=pl.Buffered(1)) instead of doubling them here.
        return min(int(2 * (weight_bytes + io_tile) + acts) + (4 << 20),
                   127 << 20)

    b16 = _round_up(B, BF16_SUBLANE)

    if b16 <= min(_round_up(block_b, BF16_SUBLANE), SINGLE_BLOCK_MAX_ROWS):
        # Single-block call: no grid, no pipeline machinery, x used as-is
        # (no batch padding, no wrapper-side pad/cast of the activations).
        out_padded = pl.pallas_call(
            mlp_kernel,
            out_shape=jax.ShapeDtypeStruct((B, out_p), jnp.float32),
            compiler_params=pltpu.CompilerParams(
                vmem_limit_bytes=vmem_limit(B)),
            cost_estimate=cost(B),
        )(x, w1_p, b1_p, w2_p, b2_p, w3_p, b3_p)
        return out_padded[:, :num_classes]

    # Batched path: 16-row-aligned batch tiles, >=2 (preferably even) grid
    # steps so dimension_semantics=("parallel",) shards across both v7x
    # TensorCores; weights/biases use constant index_maps (VMEM-resident,
    # not re-DMA'd per batch tile).
    nsteps = max(2, -(-b16 // max(block_b, BF16_SUBLANE)))
    if nsteps % 2:
        nsteps += 1
    tb = _round_up(-(-b16 // nsteps), BF16_SUBLANE)
    nsteps = -(-b16 // tb)
    b_p = tb * nsteps

    x_in = x if b_p == B else jnp.pad(x, ((0, b_p - B), (0, 0)))

    x_spec = pl.BlockSpec((tb, input_size), lambda i: (i, 0))
    o_spec = pl.BlockSpec((tb, out_p), lambda i: (i, 0))
    w1_spec = pl.BlockSpec(w1_p.shape, lambda i: (0, 0))
    w2_spec = pl.BlockSpec(w2_p.shape, lambda i: (0, 0))
    w3_spec = pl.BlockSpec(w3_p.shape, lambda i: (0, 0))
    b1_spec = pl.BlockSpec(b1_p.shape, lambda i: (0, 0))
    b2_spec = pl.BlockSpec(b2_p.shape, lambda i: (0, 0))
    b3_spec = pl.BlockSpec(b3_p.shape, lambda i: (0, 0))

    out_padded = pl.pallas_call(
        mlp_kernel,
        out_shape=jax.ShapeDtypeStruct((b_p, out_p), jnp.float32),
        grid=(nsteps,),
        in_specs=[x_spec, w1_spec, b1_spec, w2_spec, b2_spec, w3_spec, b3_spec],
        out_specs=o_spec,
        compiler_params=pltpu.CompilerParams(
            dimension_semantics=("parallel",),
            vmem_limit_bytes=vmem_limit(tb)),
        cost_estimate=cost(b_p),
    )(x_in, w1_p, b1_p, w2_p, b2_p, w3_p, b3_p)
    return out_padded[:B, :num_classes]


def init_params(key, input_size, hidden_size, num_classes):
    """Deterministic parameter init (synthetic; no checkpoint load)."""
    # TODO(synk): the original script loads sizes/weights from 'data.pth'; we
    # synthesize equivalent-shape parameters instead of reading a file.
    ks = jax.random.split(key, 6)
    # Stored as [in, out] so the kernel does x @ W + b (== torch x @ W.T + b).
    w1 = jax.random.normal(ks[0], (input_size, hidden_size), jnp.float32) * 0.1
    b1 = jax.random.normal(ks[1], (hidden_size,), jnp.float32) * 0.1
    w2 = jax.random.normal(ks[2], (hidden_size, hidden_size), jnp.float32) * 0.1
    b2 = jax.random.normal(ks[3], (hidden_size,), jnp.float32) * 0.1
    w3 = jax.random.normal(ks[4], (hidden_size, num_classes), jnp.float32) * 0.1
    b3 = jax.random.normal(ks[5], (num_classes,), jnp.float32) * 0.1
    return w1, b1, w2, b2, w3, b3


if __name__ == "__main__":
    batch = 8
    input_size = 32
    hidden_size = 32
    num_classes = 8

    key = jax.random.PRNGKey(0)
    k_x, k_x2, k_p = jax.random.split(key, 3)
    x = jax.random.normal(k_x, (batch, input_size), jnp.float32)
    params = init_params(k_p, input_size, hidden_size, num_classes)
    prepared = prepare_params(*params)  # one-time pad + bf16 cast (hoisted)

    w1, b1, w2, b2, w3, b3 = params

    def ref_bf16(xv):
        # Same bf16-operand / f32-accumulate math as the kernel (tight tol).
        h = jnp.maximum(jnp.dot(xv.astype(jnp.bfloat16), w1.astype(jnp.bfloat16),
                                preferred_element_type=jnp.float32) + b1, 0.0)
        h = jnp.maximum(jnp.dot(h.astype(jnp.bfloat16), w2.astype(jnp.bfloat16),
                                preferred_element_type=jnp.float32) + b2, 0.0)
        return jnp.dot(h.astype(jnp.bfloat16), w3.astype(jnp.bfloat16),
                       preferred_element_type=jnp.float32) + b3

    def ref_f32(xv):
        # Pure f32 forward pass (loose tol, checks semantics).
        h = jnp.maximum(xv @ w1 + b1, 0.0)
        h = jnp.maximum(h @ w2 + b2, 0.0)
        return h @ w3 + b3

    # Path 1: single-block (no grid) — the shipped small-batch case.
    out = neural_net_forward(x, prepared, num_classes=num_classes)
    out = jax.block_until_ready(out)
    assert out.shape == (batch, num_classes)
    assert jnp.allclose(out, ref_bf16(x), atol=2e-3, rtol=2e-3)
    assert jnp.allclose(out, ref_f32(x), atol=5e-2, rtol=5e-2)

    # Path 2: batched grid path (16-row tiles, parallel batch axis).
    batch2 = 40
    x2 = jax.random.normal(k_x2, (batch2, input_size), jnp.float32)
    out2 = neural_net_forward(x2, prepared, num_classes=num_classes, block_b=16)
    out2 = jax.block_until_ready(out2)
    assert out2.shape == (batch2, num_classes)
    assert jnp.allclose(out2, ref_bf16(x2), atol=2e-3, rtol=2e-3)
    assert jnp.allclose(out2, ref_f32(x2), atol=5e-2, rtol=5e-2)

    print("KERNEL_OK")
</pallas_src>

<mosaic_0001>
module attributes {stable_mosaic.version = 11 : i64} {
  func.func @mlp_kernel(%arg0: memref<8x32xf32, #tpu.memory_space<vmem>>, %arg1: memref<32x128xbf16, #tpu.memory_space<vmem>>, %arg2: memref<1x128xf32, #tpu.memory_space<vmem>>, %arg3: memref<128x128xbf16, #tpu.memory_space<vmem>>, %arg4: memref<1x128xf32, #tpu.memory_space<vmem>>, %arg5: memref<128x128xbf16, #tpu.memory_space<vmem>>, %arg6: memref<1x128xf32, #tpu.memory_space<vmem>>, %arg7: memref<8x128xf32, #tpu.memory_space<vmem>>) attributes {dimension_semantics = [], scalar_prefetch = 0 : i64, scratch_operands = 0 : i64, tpu.core_type = #tpu.core_type<tc>} {
    %c0 = arith.constant 0 : index
    %c0_0 = arith.constant 0 : index
    %0 = vector.load %arg0[%c0, %c0_0] : memref<8x32xf32, #tpu.memory_space<vmem>>, vector<8x32xf32>
    %1 = arith.truncf %0 : vector<8x32xf32> to vector<8x32xbf16>
    %c0_1 = arith.constant 0 : index
    %c0_2 = arith.constant 0 : index
    %2 = vector.load %arg1[%c0_1, %c0_2] : memref<32x128xbf16, #tpu.memory_space<vmem>>, vector<32x128xbf16>
    %cst = arith.constant dense<0.000000e+00> : vector<8x128xf32>
    %3 = tpu.matmul %1, %2, %cst {dimension_numbers = #tpu.dot_dimension_numbers<[1], [0], [0], [1], [0, 0, 1, 1], [], []>} : vector<8x32xbf16>, vector<32x128xbf16>, vector<8x128xf32> -> vector<8x128xf32>
    %c0_3 = arith.constant 0 : index
    %c0_4 = arith.constant 0 : index
    %4 = vector.load %arg2[%c0_3, %c0_4] : memref<1x128xf32, #tpu.memory_space<vmem>>, vector<1x128xf32>
    %5 = vector.broadcast %4 : vector<1x128xf32> to vector<8x128xf32>
    %6 = arith.addf %3, %5 : vector<8x128xf32>
    %cst_5 = arith.constant 0.000000e+00 : f32
    %7 = vector.broadcast %cst_5 : f32 to vector<8x128xf32>
    %8 = arith.maximumf %6, %7 : vector<8x128xf32>
    %9 = arith.truncf %8 : vector<8x128xf32> to vector<8x128xbf16>
    %c0_6 = arith.constant 0 : index
    %c0_7 = arith.constant 0 : index
    %10 = vector.load %arg3[%c0_6, %c0_7] : memref<128x128xbf16, #tpu.memory_space<vmem>>, vector<128x128xbf16>
    %cst_8 = arith.constant dense<0.000000e+00> : vector<8x128xf32>
    %11 = tpu.matmul %9, %10, %cst_8 {dimension_numbers = #tpu.dot_dimension_numbers<[1], [0], [0], [1], [0, 0, 1, 1], [], []>} : vector<8x128xbf16>, vector<128x128xbf16>, vector<8x128xf32> -> vector<8x128xf32>
    %c0_9 = arith.constant 0 : index
    %c0_10 = arith.constant 0 : index
    %12 = vector.load %arg4[%c0_9, %c0_10] : memref<1x128xf32, #tpu.memory_space<vmem>>, vector<1x128xf32>
    %13 = vector.broadcast %12 : vector<1x128xf32> to vector<8x128xf32>
    %14 = arith.addf %11, %13 : vector<8x128xf32>
    %cst_11 = arith.constant 0.000000e+00 : f32
    %15 = vector.broadcast %cst_11 : f32 to vector<8x128xf32>
    %16 = arith.maximumf %14, %15 : vector<8x128xf32>
    %17 = arith.truncf %16 : vector<8x128xf32> to vector<8x128xbf16>
    %c0_12 = arith.constant 0 : index
    %c0_13 = arith.constant 0 : index
    %18 = vector.load %arg5[%c0_12, %c0_13] : memref<128x128xbf16, #tpu.memory_space<vmem>>, vector<128x128xbf16>
    %cst_14 = arith.constant dense<0.000000e+00> : vector<8x128xf32>
    %19 = tpu.matmul %17, %18, %cst_14 {dimension_numbers = #tpu.dot_dimension_numbers<[1], [0], [0], [1], [0, 0, 1, 1], [], []>} : vector<8x128xbf16>, vector<128x128xbf16>, vector<8x128xf32> -> vector<8x128xf32>
    %c0_15 = arith.constant 0 : index
    %c0_16 = arith.constant 0 : index
    %20 = vector.load %arg6[%c0_15, %c0_16] : memref<1x128xf32, #tpu.memory_space<vmem>>, vector<1x128xf32>
    %21 = vector.broadcast %20 : vector<1x128xf32> to vector<8x128xf32>
    %22 = arith.addf %19, %21 : vector<8x128xf32>
    %c0_17 = arith.constant 0 : index
    %c0_18 = arith.constant 0 : index
    %23 = vector.load %arg7[%c0_17, %c0_18] : memref<8x128xf32, #tpu.memory_space<vmem>>, vector<8x128xf32>
    tpu.vector_store %arg7[%c0_17, %c0_18], %22 {strides = array<i32>} : memref<8x128xf32, #tpu.memory_space<vmem>>, vector<8x128xf32>,
    return
  }
}

</mosaic_0001>

<bundles_post_ra>
// kernel: neural_net_forward.1
= control target key start
LH: loop header
LB: loop body
LE: loop exit
PB: predicated region body
PF: predicated region fallthrough
CT: control target
= control target key end

     0   :  { %12 = vsyncpa [#allocation3], 0  ;;  %s614_s0 = inlined_call_operand.hbm [shape: f32[8,32], index: 0, kind: input, shape index: {}]   ;;  %s615_s1 = inlined_call_operand.hbm [shape: bf16[32,128], index: 1, kind: input, shape index: {}]   ;;  %s616_s2 = inlined_call_operand.vmem [shape: f32[1,128], index: 2, kind: input, shape index: {}]   ;;  %s617_s3 = inlined_call_operand.hbm [shape: bf16[128,128], index: 3, kind: input, shape index: {}]   ;;  %s618_s4 = inlined_call_operand.vmem [shape: f32[1,128], index: 4, kind: input, shape index: {}]   ;;  %s619_s5 = inlined_call_operand.hbm [shape: bf16[128,128], index: 5, kind: input, shape index: {}]   ;;  %s620_s6 = inlined_call_operand.vmem [shape: f32[1,128], index: 6, kind: input, shape index: {}]   ;;  %s621_s7 = inlined_call_operand.hbm [shape: f32[8,128], index: 7, kind: output, shape index: {}]  }
   0x1   :  { %13 = vsyncpa [#allocation6], 0 }
   0x2   :  { %14 = vsyncpa [#allocation9], 0  ;;  %s31_s26 = sshll.u32 %s615_s1, 4  ;;  %s32_s26 = int_to_ptr.hbm [resolvable:$true] %s31_s26 }
   0x3   :  { %15 = vsyncpa [#allocation4], 0  ;;  %s543_s27 = smov [#allocation5]   ;;  %s21_s8 = sshll.u32 %s614_s0, 4  ;;  %s22_s8 = int_to_ptr.hbm [resolvable:$true] %s21_s8 }
   0x4   :  { %s33_s28 = sshll.u32 %s543_s27, 4  ;;  %s544_s9 = smov 64   ;;  %s34_s28 = int_to_ptr.vmem [resolvable:$true] %s33_s28 }
   0x5   :  { %s545_s10 = smov 4   ;;  %s546_s11 = smov [#allocation2]  }
   0x6   :  { %39 = dma.hbm_to_vmem [thread:$0]  %s32_s26, 256, %s34_s28, [#allocation6], %s544_s9, %s544_s9, %s545_s10  }
   0x7   :  { %s23_s12 = sshll.u32 %s546_s11, 4  ;;  %s46_s15 = sshll.u32 %s617_s3, 4  ;;  %s24_s12 = int_to_ptr.vmem [resolvable:$true] %s23_s12  ;;  %s47_s15 = int_to_ptr.hbm [resolvable:$true] %s46_s15 }
   0x8   :  { %26 = dma.hbm_to_vmem [thread:$0]  %s22_s8, 128, %s24_s12, [#allocation3]  }
   0x9   :  { %s61_s17 = sshll.u32 %s619_s5, 4  ;;  %s547_s18 = smov [#allocation7]   ;;  %s62_s17 = int_to_ptr.hbm [resolvable:$true] %s61_s17 }
   0xa   :  { %s48_s19 = sshll.u32 %s547_s18, 4  ;;  %s548_s0 = smov [#allocation8]   ;;  %s49_s19 = int_to_ptr.vmem [resolvable:$true] %s48_s19 }
   0xb   :  { %54 = dma.hbm_to_vmem [thread:$0]  %s47_s15, 1024, %s49_s19, [#allocation6], %s544_s9, %s544_s9, %s545_s10  }
   0xc   :  { %s63_s20 = sshll.u32 %s548_s0, 4  ;;  %s64_s20 = int_to_ptr.vmem [resolvable:$true] %s63_s20 }
   0xd   :  { %69 = dma.hbm_to_vmem [thread:$0]  %s62_s17, 1024, %s64_s20, [#allocation9], %s544_s9, %s544_s9, %s545_s10  }
   0xe   :  { %535 = dma.done.wait [#allocation3], 128  }
   0xf   :  { %536 = vsyncadd [#allocation3], 4294967168 }
  0x10   :  { %537 = dma.done.wait [#allocation6], 1280  }
  0x11   :  { %538 = vsyncadd [#allocation6], 4294966016 }
  0x12   :  { %539 = dma.done.wait [#allocation9], 1024  }
  0x13   :  { %540 = vsyncadd [#allocation9], 4294966272  ;;  %v388_v0 = vld [vmem:[#allocation5 + $0x8] sm:$0xff]  ;;  %v387_v2 = vld [vmem:[#allocation5] sm:$0xff]  ;;  %vm111_vm0 = vcmask 261120   ;;  %s549_s24 = smov [#allocation10]  }
  0x14   :  { %v396_v1 = vld [vmem:[#allocation7 + $0x38] sm:$0xff]  ;;  %121 = vmatpush.bf16.msra.mxu0 %v388_v0  ;;  %v89_v3 = vld [vmem:[#allocation2] sm:$0xff]  ;;  %v395_v4 = vld [vmem:[#allocation7 + $0x30] sm:$0xff]  ;;  %s300_s25 = sshll.u32 %s549_s24, 4  ;;  %s302_s28 = sshll.u32 %s621_s7, 4  ;;  %s301_s25 = int_to_ptr.vmem [resolvable:$true] %s300_s25  ;;  %s303_s28 = int_to_ptr.hbm [resolvable:$true] %s302_s28 }
  0x15   :  { %198 = vmatpush.bf16.msra.mxu1 %v396_v1  ;;  %v90_v5 = vpack.c.bf16 %v89_v3, %v89_v3  ;;  %v394_v6 = vld [vmem:[#allocation7 + $0x28] sm:$0xff]  ;;  %v393_v7 = vld [vmem:[#allocation7 + $0x20] sm:$0xff]  ;;  %v392_v8 = vld [vmem:[#allocation7 + $0x18] sm:$0xff] }
  0x16   :  { %v391_v9 = vld [vmem:[#allocation7 + $0x10] sm:$0xff]  ;;  %v390_v10 = vld [vmem:[#allocation7 + $0x8] sm:$0xff]  ;;  %v389_v11 = vld [vmem:[#allocation7] sm:$0xff] }
  0x17   :  { %v404_v12 = vld [vmem:[#allocation8 + $0x38] sm:$0xff]  ;;  %v403_v13 = vld [vmem:[#allocation8 + $0x30] sm:$0xff]  ;;  %v402_v14 = vld [vmem:[#allocation8 + $0x28] sm:$0xff] }
  0x18   :  { %122 = vmatpush.bf16.msra.mxu0 %v387_v2  ;;  %281 = vmatpush.bf16.msra.mxu2 %v404_v12  ;;  %v401_v15 = vld [vmem:[#allocation8 + $0x20] sm:$0xff]  ;;  %v400_v16 = vld [vmem:[#allocation8 + $0x18] sm:$0xff]  ;;  %v399_v17 = vld [vmem:[#allocation8 + $0x10] sm:$0xff] }
  0x19   :  { %199 = vmatpush.bf16.msra.mxu1 %v395_v4  ;;  %v412_v18 = vld [vmem:[%s616_s2] ss:$0 sm:$0xff]  ;;  %v397_v25 = vld [vmem:[#allocation8] sm:$0xff] }
  0x1a   :  { %v398_v24 = vld [vmem:[#allocation8 + $0x8] sm:$0xff] }
  0x1b   :  { %322 = vmatmul.msk.bf16.vlgmr.msra.gmra.mxu0 %vm111_vm0, %v90_v5  ;;  %v413_v26 = vld [vmem:[%s618_s4] ss:$0 sm:$0xff] }
  0x1c   :  { %282 = vmatpush.bf16.msra.mxu2 %v403_v13  ;;  %v414_v32 = vld [vmem:[%s620_s6] ss:$0 sm:$0xff] }
  0x1d   :  { %200 = vmatpush.bf16.msra.mxu1 %v394_v6 }
  0x20   :  { %283 = vmatpush.bf16.msra.mxu2 %v402_v14 }
  0x21   :  { %201 = vmatpush.bf16.msra.mxu1 %v393_v7 }
  0x24   :  { %284 = vmatpush.bf16.msra.mxu2 %v401_v15 }
  0x25   :  { %202 = vmatpush.bf16.msra.mxu1 %v392_v8 }
  0x28   :  { %285 = vmatpush.bf16.msra.mxu2 %v400_v16 }
  0x29   :  { %203 = vmatpush.bf16.msra.mxu1 %v391_v9 }
  0x2c   :  { %286 = vmatpush.bf16.msra.mxu2 %v399_v17 }
  0x2d   :  { %204 = vmatpush.bf16.msra.mxu1 %v390_v10 }
  0x30   :  { %287 = vmatpush.bf16.msra.mxu2 %v398_v24 }
  0x31   :  { %205 = vmatpush.bf16.msra.mxu1 %v389_v11 }
  0x34   :  { %288 = vmatpush.bf16.msra.mxu2 %v397_v25 }
  0x98   :  { %v124_v19 = vpop.f32.mrf.mxu0 }
  0x99   :  { %v125_v20 = vadd.f32 %v412_v18, %v124_v19 }
  0x9b   :  { %v128_v21 = vmax.f32 %v125_v20, 0.0 }
  0x9d   :  { %v129_v22 = vpack.c.bf16 %v128_v21, %v128_v21 }
  0x9f   :  { %206 = vmatmul.bf16.vlgmr.msra.gmra.mxu1 %v129_v22 }
  0xa0   :  { %v126_v23 = vpop.f32.mrf.mxu0 }
 0x11c   :  { %v207_v27 = vpop.f32.mrf.mxu1 }
 0x11d   :  { %v208_v28 = vadd.f32 %v413_v26, %v207_v27 }
 0x11f   :  { %v211_v29 = vmax.f32 %v208_v28, 0.0 }
 0x121   :  { %v212_v30 = vpack.c.bf16 %v211_v29, %v211_v29 }
 0x123   :  { %289 = vmatmul.bf16.vlgmr.msra.gmra.mxu2 %v212_v30 }
 0x124   :  { %v209_v31 = vpop.f32.mrf.mxu1 }
 0x1a6   :  { %v290_v33 = vpop.f32.mrf.mxu2 }
 0x1a7   :  { %v291_v34 = vadd.f32 %v414_v32, %v290_v33 }
 0x1a9   :  { %294 = vst [vmem:[#allocation10] sm:$0xff] %v291_v34 }
 0x1aa   :  { %305 = dma.vmem_to_hbm [thread:$0]  %s301_s25, 128, %s303_s28, [#allocation4]  }
 0x1ae   :  { %v292_v35 = vpop.f32.mrf.mxu2 }
 0x1af   :  { %541 = dma.done.wait [#allocation4], 128  }
 0x1b0   :  { %542 = vsyncadd [#allocation4], 4294967168 }
 0x1b1   :  { %310 = vsyncpa [#allocation3], 1 }
 0x1b2   :  { %311 = vsyncpa [#allocation6], 1 }
 0x1b3   :  { %312 = vsyncpa [#allocation9], 1 }
 0x1b4   :  { %313 = vsyncpa [#allocation4], 1 }

</bundles_post_ra>
